<compile_context>
chip_gen: v5e
topology: v5e:2x2
jax: 0.10.0
libtpu: 0.0.40
codegen_flags: <defaults>
</compile_context>

<pallas_src>
import math
import functools

import jax
import jax.numpy as jnp
from jax import lax
from jax.experimental import pallas as pl
from jax.experimental.pallas import tpu as pltpu


# ----------------------------------------------------------------------------
# Kernels
# ----------------------------------------------------------------------------

def _accumulate_tile(x_ref, w, b_ref, o_ref, acc_ref):
    """Shared tile body: acc += x @ w.T ; finalize with bias on last k step."""
    k = pl.program_id(2)

    @pl.when(k == 0)
    def _():
        acc_ref[...] = jnp.zeros_like(acc_ref)

    # x [tm, tk] . w [tn, tk], contracting the shared 'in' axis -> [tm, tn].
    # dot_general folds the transposed-RHS contraction into the MXU (no
    # materialized w.T on the critical path).
    acc_ref[...] += lax.dot_general(
        x_ref[...], w,
        dimension_numbers=(((1,), (1,)), ((), ())),
        preferred_element_type=jnp.float32)

    @pl.when(k == pl.num_programs(2) - 1)
    def _():
        o_ref[...] = (acc_ref[...] + b_ref[...]).astype(o_ref.dtype)


def _noisy_kernel_full(x_ref, wmu_ref, wsig_ref, weps_ref, b_ref, o_ref, acc_ref):
    # Elementwise noisy-weight construction on the VPU (f32).
    w = wmu_ref[...] + wsig_ref[...] * weps_ref[...]
    _accumulate_tile(x_ref, w, b_ref, o_ref, acc_ref)


def _noisy_kernel_factorized(x_ref, wmu_ref, wsig_ref, eout_ref, ein_ref,
                             b_ref, o_ref, acc_ref):
    # Reconstruct the factorized epsilon tile: [tn,1] * [1,tk] -> [tn,tk].
    w = wmu_ref[...] + wsig_ref[...] * (eout_ref[...] * ein_ref[...])
    _accumulate_tile(x_ref, w, b_ref, o_ref, acc_ref)


def _plain_kernel(x_ref, wmu_ref, b_ref, o_ref, acc_ref):
    _accumulate_tile(x_ref, wmu_ref[...], b_ref, o_ref, acc_ref)


# ----------------------------------------------------------------------------
# Wrapper helpers
# ----------------------------------------------------------------------------

def _round_up(a, b):
    return (a + b - 1) // b * b


def _pad2(a, rows, cols):
    pr, pc = rows - a.shape[0], cols - a.shape[1]
    if pr or pc:
        a = jnp.pad(a, ((0, pr), (0, pc)))
    return a


def _choose_tiles(B, K, N):
    # 8/128-aligned tiles; capped so that (double-buffered inputs + acc) stays
    # around <= ~9 MiB of VMEM -> fits v5e's 16 MiB scoped default and leaves
    # plenty of headroom on v7x's 64 MiB physical VMEM.
    tm = min(_round_up(B, 8), 256)
    tk = min(_round_up(K, 128), 512)
    tn = min(_round_up(N, 128), 512)
    return tm, tn, tk


def _tiled_linear_call(kernel, x_p, w_arrays, w_specs, bias_p, tm, tn, tk,
                       out_dtype):
    Bp, Kp = x_p.shape
    Np = bias_p.shape[1]
    grid = (Bp // tm, Np // tn, Kp // tk)

    in_specs = ([pl.BlockSpec((tm, tk), lambda i, j, k: (i, k))]
                + list(w_specs)
                + [pl.BlockSpec((1, tn), lambda i, j, k: (0, j))])

    cost = pl.CostEstimate(
        flops=2 * Bp * Kp * Np,
        transcendentals=0,
        bytes_accessed=4 * (x_p.size + sum(int(w.size) for w in w_arrays)
                            + bias_p.size + Bp * Np))

    return pl.pallas_call(
        kernel,
        out_shape=jax.ShapeDtypeStruct((Bp, Np), out_dtype),
        grid_spec=pltpu.PrefetchScalarGridSpec(
            num_scalar_prefetch=0,
            grid=grid,
            in_specs=in_specs,
            out_specs=pl.BlockSpec((tm, tn), lambda i, j, k: (i, j)),
            scratch_shapes=[pltpu.VMEM((tm, tn), jnp.float32)],
        ),
        compiler_params=pltpu.CompilerParams(
            dimension_semantics=("parallel", "parallel", "arbitrary"),
            vmem_limit_bytes=32 * 1024 * 1024),
        cost_estimate=cost,
    )(x_p, *w_arrays, bias_p)


# ----------------------------------------------------------------------------
# Public entry points
# ----------------------------------------------------------------------------

@functools.partial(jax.jit, static_argnames=("training",))
def noisy_linear(x, weight_mu, weight_sigma, weight_epsilon,
                 bias_mu, bias_sigma, bias_epsilon, *, training=True):
    """NoisyLinear forward with a full [out, in] weight_epsilon buffer."""
    B, K = x.shape
    N = weight_mu.shape[0]
    tm, tn, tk = _choose_tiles(B, K, N)
    Bp, Kp, Np = _round_up(B, tm), _round_up(K, tk), _round_up(N, tn)

    x_p = _pad2(x, Bp, Kp)
    wmu_p = _pad2(weight_mu, Np, Kp)
    w_tile_spec = pl.BlockSpec((tn, tk), lambda i, j, k: (j, k))

    if training:
        wsig_p = _pad2(weight_sigma, Np, Kp)
        weps_p = _pad2(weight_epsilon, Np, Kp)
        bias = (bias_mu + bias_sigma * bias_epsilon).reshape(1, N)
        y_p = _tiled_linear_call(
            _noisy_kernel_full, x_p, [wmu_p, wsig_p, weps_p],
            [w_tile_spec, w_tile_spec, w_tile_spec],
            _pad2(bias, 1, Np), tm, tn, tk, x.dtype)
    else:
        # Eval path: one weight matrix, one bias — no epsilon DMA at all.
        y_p = _tiled_linear_call(
            _plain_kernel, x_p, [wmu_p], [w_tile_spec],
            _pad2(bias_mu.reshape(1, N), 1, Np), tm, tn, tk, x.dtype)

    return y_p[:B, :N]


@jax.jit
def noisy_linear_factorized(x, weight_mu, weight_sigma, eps_in, eps_out,
                            bias_mu, bias_sigma, bias_epsilon):
    """Training-mode forward exploiting weight_epsilon = outer(eps_out, eps_in).

    Streams only 2 full matrices + 2 vectors (~33% less HBM traffic than the
    full-epsilon path).
    """
    B, K = x.shape
    N = weight_mu.shape[0]
    tm, tn, tk = _choose_tiles(B, K, N)
    Bp, Kp, Np = _round_up(B, tm), _round_up(K, tk), _round_up(N, tn)

    x_p = _pad2(x, Bp, Kp)
    wmu_p = _pad2(weight_mu, Np, Kp)
    wsig_p = _pad2(weight_sigma, Np, Kp)
    eout_p = _pad2(eps_out.reshape(N, 1), Np, 1)
    ein_p = _pad2(eps_in.reshape(1, K), 1, Kp)
    bias = (bias_mu + bias_sigma * bias_epsilon).reshape(1, N)

    w_tile_spec = pl.BlockSpec((tn, tk), lambda i, j, k: (j, k))
    w_specs = [
        w_tile_spec,                                        # weight_mu
        w_tile_spec,                                        # weight_sigma
        pl.BlockSpec((tn, 1), lambda i, j, k: (j, 0)),      # eps_out column
        pl.BlockSpec((1, tk), lambda i, j, k: (0, k)),      # eps_in row
    ]
    y_p = _tiled_linear_call(
        _noisy_kernel_factorized, x_p, [wmu_p, wsig_p, eout_p, ein_p],
        w_specs, _pad2(bias, 1, Np), tm, tn, tk, x.dtype)
    return y_p[:B, :N]


# ----------------------------------------------------------------------------
# Parameter / noise init (mirrors the PyTorch module)
# ----------------------------------------------------------------------------

def _scale_noise(key, size):
    x = jax.random.normal(key, (size,), dtype=jnp.float32)
    return jnp.sign(x) * jnp.sqrt(jnp.abs(x))


def init_noisy_linear(key, in_features, out_features, std_init=0.4):
    k_wmu, k_bmu, k_ein, k_eout, k_beps = jax.random.split(key, 5)
    mu_range = 1.0 / math.sqrt(in_features)

    weight_mu = jax.random.uniform(
        k_wmu, (out_features, in_features), jnp.float32, -mu_range, mu_range)
    weight_sigma = jnp.full((out_features, in_features),
                            std_init / math.sqrt(in_features), jnp.float32)
    bias_mu = jax.random.uniform(
        k_bmu, (out_features,), jnp.float32, -mu_range, mu_range)
    bias_sigma = jnp.full((out_features,),
                          std_init / math.sqrt(out_features), jnp.float32)

    # reset_noise(): factorized Gaussian noise.
    eps_in = _scale_noise(k_ein, in_features)
    eps_out = _scale_noise(k_eout, out_features)
    weight_epsilon = jnp.outer(eps_out, eps_in)
    bias_epsilon = _scale_noise(k_beps, out_features)

    return dict(weight_mu=weight_mu, weight_sigma=weight_sigma,
                weight_epsilon=weight_epsilon, eps_in=eps_in, eps_out=eps_out,
                bias_mu=bias_mu, bias_sigma=bias_sigma,
                bias_epsilon=bias_epsilon)


if __name__ == "__main__":
    key = jax.random.PRNGKey(0)
    k_params, k_x = jax.random.split(key)

    batch, in_features, out_features = 8, 32, 64
    params = init_noisy_linear(k_params, in_features, out_features)
    x = jax.random.normal(k_x, (batch, in_features), dtype=jnp.float32)

    # Pure-JAX reference (training path).
    w_ref = params["weight_mu"] + params["weight_sigma"] * params["weight_epsilon"]
    b_ref = params["bias_mu"] + params["bias_sigma"] * params["bias_epsilon"]
    y_ref = x @ w_ref.T + b_ref

    # 1) Training path with the full weight_epsilon buffer (torch semantics).
    y = noisy_linear(x, params["weight_mu"], params["weight_sigma"],
                     params["weight_epsilon"], params["bias_mu"],
                     params["bias_sigma"], params["bias_epsilon"],
                     training=True)
    jax.block_until_ready(y)
    assert jnp.allclose(y, y_ref, atol=1e-5, rtol=1e-5)

    # 2) Factorized-noise fast path (same result, 1 less weight matrix of DMA).
    y_fact = noisy_linear_factorized(
        x, params["weight_mu"], params["weight_sigma"],
        params["eps_in"], params["eps_out"],
        params["bias_mu"], params["bias_sigma"], params["bias_epsilon"])
    jax.block_until_ready(y_fact)
    assert jnp.allclose(y_fact, y_ref, atol=1e-5, rtol=1e-5)

    # 3) Eval path (mu-only plain linear kernel).
    y_eval = noisy_linear(x, params["weight_mu"], params["weight_sigma"],
                          params["weight_epsilon"], params["bias_mu"],
                          params["bias_sigma"], params["bias_epsilon"],
                          training=False)
    jax.block_until_ready(y_eval)
    assert jnp.allclose(y_eval, x @ params["weight_mu"].T + params["bias_mu"],
                        atol=1e-5, rtol=1e-5)

    print("KERNEL_OK")
</pallas_src>

<mosaic_0001>
module attributes {stable_mosaic.version = 11 : i64} {
  func.func @_noisy_kernel_full(%arg0: i32, %arg1: i32, %arg2: i32, %arg3: memref<8x128xf32, #tpu.memory_space<vmem>>, %arg4: memref<128x128xf32, #tpu.memory_space<vmem>>, %arg5: memref<128x128xf32, #tpu.memory_space<vmem>>, %arg6: memref<128x128xf32, #tpu.memory_space<vmem>>, %arg7: memref<1x128xf32, #tpu.memory_space<vmem>>, %arg8: memref<8x128xf32, #tpu.memory_space<vmem>>, %arg9: memref<8x128xf32, #tpu.memory_space<vmem>>) attributes {dimension_semantics = [#tpu.dimension_semantics<parallel>, #tpu.dimension_semantics<parallel>, #tpu.dimension_semantics<arbitrary>], iteration_bounds = array<i64: 1, 1, 1>, scalar_prefetch = 0 : i64, scratch_operands = 1 : i64, tpu.core_type = #tpu.core_type<tc>, window_params = [{transform_indices = @transform_0, window_bounds = array<i64: 8, 128>}, {transform_indices = @transform_1, window_bounds = array<i64: 128, 128>}, {transform_indices = @transform_2, window_bounds = array<i64: 128, 128>}, {transform_indices = @transform_3, window_bounds = array<i64: 128, 128>}, {transform_indices = @transform_4, window_bounds = array<i64: 1, 128>}, {transform_indices = @transform_5, window_bounds = array<i64: 8, 128>}]} {
    %c0 = arith.constant 0 : index
    %c0_0 = arith.constant 0 : index
    %0 = vector.load %arg4[%c0, %c0_0] : memref<128x128xf32, #tpu.memory_space<vmem>>, vector<128x128xf32>
    %c0_1 = arith.constant 0 : index
    %c0_2 = arith.constant 0 : index
    %1 = vector.load %arg5[%c0_1, %c0_2] : memref<128x128xf32, #tpu.memory_space<vmem>>, vector<128x128xf32>
    %c0_3 = arith.constant 0 : index
    %c0_4 = arith.constant 0 : index
    %2 = vector.load %arg6[%c0_3, %c0_4] : memref<128x128xf32, #tpu.memory_space<vmem>>, vector<128x128xf32>
    %3 = arith.mulf %1, %2 : vector<128x128xf32>
    %4 = arith.addf %0, %3 : vector<128x128xf32>
    %c0_i32 = arith.constant 0 : i32
    %5 = arith.cmpi eq, %arg2, %c0_i32 : i32
    %6 = arith.extui %5 : i1 to i32
    %c0_i32_5 = arith.constant 0 : i32
    %7 = arith.cmpi ne, %6, %c0_i32_5 : i32
    scf.if %7 {
      %cst_14 = arith.constant 0.000000e+00 : f32
      %16 = vector.broadcast %cst_14 : f32 to vector<8x128xf32>
      %c0_15 = arith.constant 0 : index
      %c0_16 = arith.constant 0 : index
      %17 = vector.load %arg9[%c0_15, %c0_16] : memref<8x128xf32, #tpu.memory_space<vmem>>, vector<8x128xf32>
      tpu.vector_store %arg9[%c0_15, %c0_16], %16 {strides = array<i32>} : memref<8x128xf32, #tpu.memory_space<vmem>>, vector<8x128xf32>,
    } else {
    }
    %c0_6 = arith.constant 0 : index
    %c0_7 = arith.constant 0 : index
    %8 = vector.load %arg9[%c0_6, %c0_7] : memref<8x128xf32, #tpu.memory_space<vmem>>, vector<8x128xf32>
    %c0_8 = arith.constant 0 : index
    %c0_9 = arith.constant 0 : index
    %9 = vector.load %arg3[%c0_8, %c0_9] : memref<8x128xf32, #tpu.memory_space<vmem>>, vector<8x128xf32>
    %cst = arith.constant dense<0.000000e+00> : vector<8x128xf32>
    %10 = tpu.matmul %9, %4, %cst {dimension_numbers = #tpu.dot_dimension_numbers<[1], [1], [0], [0], [0, 0, 1, 0], [], []>} : vector<8x128xf32>, vector<128x128xf32>, vector<8x128xf32> -> vector<8x128xf32>
    %11 = arith.addf %8, %10 : vector<8x128xf32>
    %c0_10 = arith.constant 0 : index
    %c0_11 = arith.constant 0 : index
    %12 = vector.load %arg9[%c0_10, %c0_11] : memref<8x128xf32, #tpu.memory_space<vmem>>, vector<8x128xf32>
    tpu.vector_store %arg9[%c0_10, %c0_11], %11 {strides = array<i32>} : memref<8x128xf32, #tpu.memory_space<vmem>>, vector<8x128xf32>,
    %c0_i32_12 = arith.constant 0 : i32
    %13 = arith.cmpi eq, %arg2, %c0_i32_12 : i32
    %14 = arith.extui %13 : i1 to i32
    %c0_i32_13 = arith.constant 0 : i32
    %15 = arith.cmpi ne, %14, %c0_i32_13 : i32
    scf.if %15 {
      %c0_14 = arith.constant 0 : index
      %c0_15 = arith.constant 0 : index
      %16 = vector.load %arg9[%c0_14, %c0_15] : memref<8x128xf32, #tpu.memory_space<vmem>>, vector<8x128xf32>
      %c0_16 = arith.constant 0 : index
      %c0_17 = arith.constant 0 : index
      %17 = vector.load %arg7[%c0_16, %c0_17] : memref<1x128xf32, #tpu.memory_space<vmem>>, vector<1x128xf32>
      %18 = vector.broadcast %17 : vector<1x128xf32> to vector<8x128xf32>
      %19 = arith.addf %16, %18 : vector<8x128xf32>
      %c0_18 = arith.constant 0 : index
      %c0_19 = arith.constant 0 : index
      %20 = vector.load %arg8[%c0_18, %c0_19] : memref<8x128xf32, #tpu.memory_space<vmem>>, vector<8x128xf32>
      tpu.vector_store %arg8[%c0_18, %c0_19], %19 {strides = array<i32>} : memref<8x128xf32, #tpu.memory_space<vmem>>, vector<8x128xf32>,
    } else {
    }
    return
  }
  func.func @transform_0(%arg0: i32, %arg1: i32, %arg2: i32) -> (i32, i32) {
    %c0_i32 = arith.constant 0 : i32
    return %arg0, %arg2 : i32, i32
  }
  func.func @transform_1(%arg0: i32, %arg1: i32, %arg2: i32) -> (i32, i32) {
    %c0_i32 = arith.constant 0 : i32
    return %arg1, %arg2 : i32, i32
  }
  func.func @transform_2(%arg0: i32, %arg1: i32, %arg2: i32) -> (i32, i32) {
    %c0_i32 = arith.constant 0 : i32
    return %arg1, %arg2 : i32, i32
  }
  func.func @transform_3(%arg0: i32, %arg1: i32, %arg2: i32) -> (i32, i32) {
    %c0_i32 = arith.constant 0 : i32
    return %arg1, %arg2 : i32, i32
  }
  func.func @transform_4(%arg0: i32, %arg1: i32, %arg2: i32) -> (i32, i32) {
    %c0_i32 = arith.constant 0 : i32
    %c0_i32_0 = arith.constant 0 : i32
    return %c0_i32, %arg1 : i32, i32
  }
  func.func @transform_5(%arg0: i32, %arg1: i32, %arg2: i32) -> (i32, i32) {
    %c0_i32 = arith.constant 0 : i32
    return %arg0, %arg1 : i32, i32
  }
}

</mosaic_0001>

<bundles_post_ra>
// kernel: noisy_linear.1
= control target key start
LH: loop header
LB: loop body
LE: loop exit
PB: predicated region body
PF: predicated region fallthrough
CT: control target
= control target key end

     0   :  { %s368_s0 = inlined_call_operand.vmem [shape: f32[8,128], index: 0, kind: input, shape index: {}]   ;;  %s369_s1 = inlined_call_operand.vmem [shape: f32[128,128], index: 1, kind: input, shape index: {}]   ;;  %s370_s2 = inlined_call_operand.vmem [shape: f32[128,128], index: 2, kind: input, shape index: {}]   ;;  %s371_s3 = inlined_call_operand.vmem [shape: f32[128,128], index: 3, kind: input, shape index: {}]   ;;  %s372_s4 = inlined_call_operand.vmem [shape: f32[1,128], index: 4, kind: input, shape index: {}]   ;;  %s373_s5 = inlined_call_operand.hbm [shape: f32[8,128], index: 5, kind: output, shape index: {}]  }
   0x1   :  { %v36_v0 = vld [vmem:[%s369_s1 + $0x78] sm:$0xff]  ;;  %v51_v4 = vld [vmem:[%s370_s2 + $0x70] sm:$0xff]  ;;  %v50_v8 = vld [vmem:[%s370_s2 + $0x68] sm:$0xff] }
   0x2   :  { %v52_v1 = vld [vmem:[%s370_s2 + $0x78] sm:$0xff]  ;;  %v67_v5 = vld [vmem:[%s371_s3 + $0x70] sm:$0xff]  ;;  %v66_v9 = vld [vmem:[%s371_s3 + $0x68] sm:$0xff] }
   0x3   :  { %v68_v2 = vld [vmem:[%s371_s3 + $0x78] sm:$0xff]  ;;  %v35_v6 = vld [vmem:[%s369_s1 + $0x70] sm:$0xff]  ;;  %v83_v7 = vmul.f32 %v67_v5, %v51_v4  ;;  %v82_v12 = vmul.f32 %v66_v9, %v50_v8  ;;  %v34_v13 = vld [vmem:[%s369_s1 + $0x68] sm:$0xff] }
   0x4   :  { %v84_v3 = vmul.f32 %v68_v2, %v52_v1  ;;  %v49_v14 = vld [vmem:[%s370_s2 + $0x60] sm:$0xff]  ;;  %v48_v19 = vld [vmem:[%s370_s2 + $0x58] sm:$0xff] }
   0x5   :  { %v99_v11 = vadd.f32 %v83_v7, %v35_v6  ;;  %v65_v15 = vld [vmem:[%s371_s3 + $0x60] sm:$0xff]  ;;  %v98_v16 = vadd.f32 %v82_v12, %v34_v13  ;;  %v64_v20 = vld [vmem:[%s371_s3 + $0x58] sm:$0xff] }
   0x6   :  { %v100_v10 = vadd.f32 %v84_v3, %v36_v0  ;;  %v81_v17 = vmul.f32 %v65_v15, %v49_v14  ;;  %v33_v18 = vld [vmem:[%s369_s1 + $0x60] sm:$0xff] }
   0x8   :  { %108 = vmatpush.xpose.msra.mxu0 %v100_v10 }
   0xc   :  { %109 = vmatpush.xpose.msra.mxu0 %v99_v11 }
   0xd   :  { %10 = vsyncpa [#allocation4], 0  ;;  %v97_v21 = vadd.f32 %v81_v17, %v33_v18  ;;  %v80_v22 = vmul.f32 %v64_v20, %v48_v19  ;;  %v32_v23 = vld [vmem:[%s369_s1 + $0x58] sm:$0xff]  ;;  %v47_v24 = vld [vmem:[%s370_s2 + $0x50] sm:$0xff]  ;;  %s147_s20 = sshll.u32 %s373_s5, 4  ;;  %s148_s20 = int_to_ptr.hbm [resolvable:$true] %s147_s20 }
   0xe   :  { %v63_v25 = vld [vmem:[%s371_s3 + $0x50] sm:$0xff]  ;;  %v46_v29 = vld [vmem:[%s370_s2 + $0x48] sm:$0xff]  ;;  %v45_v34 = vld [vmem:[%s370_s2 + $0x40] sm:$0xff] }
   0xf   :  { %v96_v26 = vadd.f32 %v80_v22, %v32_v23  ;;  %v79_v27 = vmul.f32 %v63_v25, %v47_v24  ;;  %v31_v28 = vld [vmem:[%s369_s1 + $0x50] sm:$0xff]  ;;  %v62_v30 = vld [vmem:[%s371_s3 + $0x48] sm:$0xff]  ;;  %v61_v35 = vld [vmem:[%s371_s3 + $0x40] sm:$0xff] }
  0x10   :  { %110 = vmatpush.xpose.msra.mxu0 %v98_v16  ;;  %v78_v32 = vmul.f32 %v62_v30, %v46_v29  ;;  %v30_v33 = vld [vmem:[%s369_s1 + $0x48] sm:$0xff]  ;;  %v77_v37 = vmul.f32 %v61_v35, %v45_v34  ;;  %v29_v38 = vld [vmem:[%s369_s1 + $0x40] sm:$0xff]  ;;  %v44_v39 = vld [vmem:[%s370_s2 + $0x38] sm:$0xff] }
  0x11   :  { %v95_v31 = vadd.f32 %v79_v27, %v31_v28  ;;  %v60_v40 = vld [vmem:[%s371_s3 + $0x38] sm:$0xff]  ;;  %v43_v44 = vld [vmem:[%s370_s2 + $0x30] sm:$0xff]  ;;  %v42_v49 = vld [vmem:[%s370_s2 + $0x28] sm:$0xff] }
  0x12   :  { %v94_v36 = vadd.f32 %v78_v32, %v30_v33  ;;  %v93_v41 = vadd.f32 %v77_v37, %v29_v38  ;;  %v76_v42 = vmul.f32 %v60_v40, %v44_v39  ;;  %v28_v43 = vld [vmem:[%s369_s1 + $0x38] sm:$0xff]  ;;  %v59_v45 = vld [vmem:[%s371_s3 + $0x30] sm:$0xff]  ;;  %v58_v50 = vld [vmem:[%s371_s3 + $0x28] sm:$0xff] }
  0x13   :  { %v75_v47 = vmul.f32 %v59_v45, %v43_v44  ;;  %v27_v48 = vld [vmem:[%s369_s1 + $0x30] sm:$0xff]  ;;  %v74_v52 = vmul.f32 %v58_v50, %v42_v49  ;;  %v26_v53 = vld [vmem:[%s369_s1 + $0x28] sm:$0xff]  ;;  %v41_v54 = vld [vmem:[%s370_s2 + $0x20] sm:$0xff] }
  0x14   :  { %111 = vmatpush.xpose.msra.mxu0 %v97_v21  ;;  %v92_v46 = vadd.f32 %v76_v42, %v28_v43  ;;  %v57_v55 = vld [vmem:[%s371_s3 + $0x20] sm:$0xff]  ;;  %v40_v59 = vld [vmem:[%s370_s2 + $0x18] sm:$0xff]  ;;  %v39_v0 = vld [vmem:[%s370_s2 + $0x10] sm:$0xff] }
  0x15   :  { %v91_v51 = vadd.f32 %v75_v47, %v27_v48  ;;  %v90_v56 = vadd.f32 %v74_v52, %v26_v53  ;;  %v73_v57 = vmul.f32 %v57_v55, %v41_v54  ;;  %v25_v58 = vld [vmem:[%s369_s1 + $0x20] sm:$0xff]  ;;  %v56_v60 = vld [vmem:[%s371_s3 + $0x18] sm:$0xff]  ;;  %v55_v1 = vld [vmem:[%s371_s3 + $0x10] sm:$0xff] }
  0x16   :  { %v72_v62 = vmul.f32 %v56_v60, %v40_v59  ;;  %v24_v63 = vld [vmem:[%s369_s1 + $0x18] sm:$0xff]  ;;  %v71_v3 = vmul.f32 %v55_v1, %v39_v0  ;;  %v23_v4 = vld [vmem:[%s369_s1 + $0x10] sm:$0xff]  ;;  %v38_v5 = vld [vmem:[%s370_s2 + $0x8] sm:$0xff] }
  0x17   :  { %v89_v61 = vadd.f32 %v73_v57, %v25_v58  ;;  %v54_v6 = vld [vmem:[%s371_s3 + $0x8] sm:$0xff]  ;;  %v37_v10 = vld [vmem:[%s370_s2] sm:$0xff] }
  0x18   :  { %112 = vmatpush.xpose.msra.mxu0 %v96_v26  ;;  %v88_v2 = vadd.f32 %v72_v62, %v24_v63  ;;  %v87_v7 = vadd.f32 %v71_v3, %v23_v4  ;;  %v70_v8 = vmul.f32 %v54_v6, %v38_v5  ;;  %v22_v9 = vld [vmem:[%s369_s1 + $0x8] sm:$0xff]  ;;  %v53_v11 = vld [vmem:[%s371_s3] sm:$0xff]  ;;  %s184_s3 = smov [#allocation3]  }
  0x19   :  { %v69_v13 = vmul.f32 %v53_v11, %v37_v10  ;;  %v21_v14 = vld [vmem:[%s369_s1] sm:$0xff]  ;;  %s145_s17 = sshll.u32 %s184_s3, 4  ;;  %s146_s17 = int_to_ptr.vmem [resolvable:$true] %s145_s17 }
  0x1a   :  { %v86_v12 = vadd.f32 %v70_v8, %v22_v9  ;;  %v107_v16 = vld [vmem:[%s368_s0] sm:$0xff] }
  0x1b   :  { %v85_v15 = vadd.f32 %v69_v13, %v21_v14  ;;  %v157_v17 = vld [vmem:[%s372_s4] ss:$0 sm:$0xff] }
  0x1c   :  { %113 = vmatpush.xpose.msra.mxu0 %v95_v31 }
  0x20   :  { %114 = vmatpush.xpose.msra.mxu0 %v94_v36 }
  0x24   :  { %115 = vmatpush.xpose.msra.mxu0 %v93_v41 }
  0x28   :  { %116 = vmatpush.xpose.msra.mxu0 %v92_v46 }
  0x2c   :  { %117 = vmatpush.xpose.msra.mxu0 %v91_v51 }
  0x30   :  { %118 = vmatpush.xpose.msra.mxu0 %v90_v56 }
  0x34   :  { %119 = vmatpush.xpose.msra.mxu0 %v89_v61 }
  0x38   :  { %120 = vmatpush.xpose.msra.mxu0 %v88_v2 }
  0x3c   :  { %121 = vmatpush.xpose.msra.mxu0 %v87_v7 }
  0x40   :  { %122 = vmatpush.xpose.msra.mxu0 %v86_v12 }
  0x44   :  { %123 = vmatpush.xpose.msra.mxu0 %v85_v15 }
  0x47   :  { %124 = vmatmul.f32.vlgmr.msra.gmra.mxu0 %v107_v16 }
  0xc4   :  { %v125_v18 = vpop.f32.mrf.mxu0 }
  0xc5   :  { %v138_v19 = vadd.f32 %v157_v17, %v125_v18 }
  0xc7   :  { %139 = vst [vmem:[#allocation3] sm:$0xff] %v138_v19 }
  0xc8   :  { %150 = dma.vmem_to_hbm [thread:$0]  %s146_s17, 128, %s148_s20, [#allocation4]  }
  0xc9   :  { %182 = dma.done.wait [#allocation4], 128  }
  0xca   :  { %183 = vsyncadd [#allocation4], 4294967168 }
  0xcb   :  { %155 = vsyncpa [#allocation4], 1 }

</bundles_post_ra>
